<compile_context>
chip_gen: v6e
topology: v6e:2x2x1
jax: 0.10.0
libtpu: 0.0.40
codegen_flags: <defaults>
</compile_context>

<pallas_src>
from typing import NamedTuple

import jax
import jax.numpy as jnp
from jax.experimental import pallas as pl
from jax.experimental.pallas import tpu as pltpu

LANE = 128     # TPU lane width: feature dims padded to multiples of this.
SUBLANE = 8    # sublane width: batch tiles rounded to multiples of this.


def _round_up(n: int, m: int) -> int:
    return (n + m - 1) // m * m


class PreparedParams(NamedTuple):
    w1: jax.Array          # (IN_P, H)   compute dtype, zero-padded
    w2: jax.Array          # (H, H)
    w3: jax.Array          # (H, H)
    w4: jax.Array          # (H, OUT_P)
    b_packed: jax.Array    # (1, 4*P) float32, P = max(H, OUT_P)
    input_size: int        # true (unpadded) input feature count
    output_size: int       # true (unpadded) output feature count


def prepare_params(params, compute_dtype=jnp.bfloat16):
    """One-time parameter prep (call at init, NOT per forward step).

    Transposes nn.Linear weights to (in, out), zero-pads ALL feature dims
    (including the layer-1 contraction dim) to 128 lanes, casts matmul
    operands to `compute_dtype` (bf16 default, f32 for exact numerics), and
    packs the four bias vectors into a single f32 buffer (one resident DMA).
    """
    w1, b1, w2, b2, w3, b3, w4, b4 = params
    input_size = w1.shape[1]
    hidden = w1.shape[0]
    output_size = w4.shape[0]
    IN_P = _round_up(input_size, LANE)
    H = _round_up(hidden, LANE)
    OUT_P = _round_up(output_size, LANE)
    P = max(H, OUT_P)

    def prep_w(w, rows, cols):
        wt = jnp.asarray(w, jnp.float32).T                      # (in, out)
        wt = jnp.pad(wt, ((0, rows - wt.shape[0]), (0, cols - wt.shape[1])))
        return wt.astype(compute_dtype)

    def prep_b(b):
        b = jnp.asarray(b, jnp.float32)
        return jnp.pad(b, (0, P - b.shape[0]))

    w1p = prep_w(w1, IN_P, H)
    w2p = prep_w(w2, H, H)
    w3p = prep_w(w3, H, H)
    w4p = prep_w(w4, H, OUT_P)
    b_packed = jnp.concatenate(
        [prep_b(b1), prep_b(b2), prep_b(b3), prep_b(b4)]).reshape(1, 4 * P)
    return PreparedParams(w1p, w2p, w3p, w4p, b_packed, input_size, output_size)


def _mlp_kernel(x_ref, w1_ref, w2_ref, w3_ref, w4_ref, b_ref, o_ref):
    """relu(relu(relu(x@W1+b1)@W2+b2)@W3+b3)@W4+b4 on one (TM, ...) batch tile.

    x_ref already holds the compute dtype (cast once in the wrapper); MXU
    accumulation and the bias/ReLU epilogue are f32.  All feature dims are
    128-lane padded, so every dot and the output store are lane-dense.
    """
    cdt = w1_ref.dtype                 # matmul operand dtype (f32 or bf16)
    H = w1_ref.shape[1]                # padded hidden width
    out_p = w4_ref.shape[1]            # padded output width
    P = b_ref.shape[1] // 4            # per-bias stride in the packed buffer

    b1 = b_ref[:, 0 * P:0 * P + H]     # static, lane-aligned slices (f32)
    b2 = b_ref[:, 1 * P:1 * P + H]
    b3 = b_ref[:, 2 * P:2 * P + H]
    b4 = b_ref[:, 3 * P:3 * P + out_p]

    h = jnp.dot(x_ref[...], w1_ref[...], preferred_element_type=jnp.float32) + b1
    h = jnp.maximum(h, 0.0)
    h = jnp.dot(h.astype(cdt), w2_ref[...], preferred_element_type=jnp.float32) + b2
    h = jnp.maximum(h, 0.0)
    h = jnp.dot(h.astype(cdt), w3_ref[...], preferred_element_type=jnp.float32) + b3
    h = jnp.maximum(h, 0.0)
    o_ref[...] = (jnp.dot(h.astype(cdt), w4_ref[...],
                          preferred_element_type=jnp.float32)
                  + b4).astype(o_ref.dtype)


def mlp_regressor_forward(X, time_cond, maskX, prepared: PreparedParams, *,
                          batch_tile: int = 512,
                          out_dtype=jnp.float32,
                          return_padded: bool = False):
    """Pallas-backed MLPRegressor.forward.

    time_cond / maskX are accepted but unused (exactly as in the PyTorch
    module).  `batch_tile` is sweepable (256/512/1024 all fit VMEM easily);
    `out_dtype=jnp.bfloat16` halves the padded output write; passing
    `return_padded=True` skips the post-kernel slice pass (consumer indexes
    `[:, :output_size]` itself, ideally fused into its next op).
    """
    del time_cond, maskX
    w1p, w2p, w3p, w4p, b_packed, input_size, output_size = prepared
    B = X.shape[0]
    # Producers that already hold a flat (B, input_size) activation can pass
    # it directly; otherwise flatten here (single op, jitted).
    x = X if X.ndim == 2 else X.reshape(B, -1)
    in_p = w1p.shape[0]
    if x.shape[1] != in_p:                       # pad K dim to 128 lanes
        x = jnp.pad(x, ((0, 0), (0, in_p - x.shape[1])))
    # Pre-cast activation to the compute dtype: halves the dominant HBM read
    # in the bf16 path and removes the in-kernel full-tile cast.
    x = x.astype(w1p.dtype)
    H = w1p.shape[1]
    out_p = w4p.shape[1]

    # Batch tiling: full batch if it fits one sublane group, otherwise ensure
    # >= 2 grid steps (v7x megacore can shard the "parallel" axis across both
    # TensorCores; the extra step is ~0.35 us on single-TC chips).
    if B <= SUBLANE:
        tm = B
    else:
        tm = min(batch_tile, _round_up(pl.cdiv(B, 2), SUBLANE))
    grid = (pl.cdiv(B, tm),)

    def nbytes(a):
        return a.size * a.dtype.itemsize

    cost = pl.CostEstimate(
        flops=2 * B * (in_p * H + H * H + H * H + H * out_p),
        transcendentals=0,
        bytes_accessed=(nbytes(x) + nbytes(w1p) + nbytes(w2p) + nbytes(w3p)
                        + nbytes(w4p) + nbytes(b_packed)
                        + B * out_p * jnp.dtype(out_dtype).itemsize),
    )

    # VMEM budget: double-buffered streaming tiles + resident weights + f32
    # intermediate headroom; clamped to v7x's 64 MiB physical VMEM.
    weights_bytes = (nbytes(w1p) + nbytes(w2p) + nbytes(w3p) + nbytes(w4p)
                     + nbytes(b_packed))
    vmem_est = (2 * tm * (in_p * x.dtype.itemsize
                          + out_p * jnp.dtype(out_dtype).itemsize)
                + 2 * weights_bytes
                + 4 * tm * max(H, out_p) * 4)
    vmem_limit = int(max(32 << 20, min(_round_up(2 * vmem_est, 1 << 20), 64 << 20)))

    def resident(arr):
        # Full-extent block whose index never changes -> stays VMEM-resident
        # across all batch-tile grid steps (weights DMA'd once).
        # (Could also be pipeline_mode=pl.Buffered(1) to drop the pointless
        #  second buffer; left default for maximum lowering compatibility.)
        return pl.BlockSpec(arr.shape, lambda i, _nd=arr.ndim: (0,) * _nd)

    out_padded = pl.pallas_call(
        _mlp_kernel,
        out_shape=jax.ShapeDtypeStruct((B, out_p), out_dtype),
        grid=grid,
        in_specs=[
            pl.BlockSpec((tm, in_p), lambda i: (i, 0)),   # activations: batch-tiled
            resident(w1p), resident(w2p), resident(w3p), resident(w4p),
            resident(b_packed),
        ],
        out_specs=pl.BlockSpec((tm, out_p), lambda i: (i, 0)),  # lane-dense store
        compiler_params=pltpu.CompilerParams(
            dimension_semantics=("parallel",),   # megacore-shard the batch axis
            vmem_limit_bytes=vmem_limit,
        ),
        cost_estimate=cost,
    )(x, w1p, w2p, w3p, w4p, b_packed)

    if return_padded:
        return out_padded                      # consumer slices [:, :output_size]
    return out_padded[:, :output_size]         # drop the 128-lane padding


def init_params(key, input_size, hidden_size, output_size):
    """Deterministic synthetic init (PyTorch nn.Linear-like uniform fan-in)."""
    keys = jax.random.split(key, 8)

    def linear(kw, kb, fan_in, fan_out):
        bound = 1.0 / jnp.sqrt(fan_in)
        w = jax.random.uniform(kw, (fan_out, fan_in), jnp.float32, -bound, bound)
        b = jax.random.uniform(kb, (fan_out,), jnp.float32, -bound, bound)
        return w, b

    w1, b1 = linear(keys[0], keys[1], input_size, hidden_size)
    w2, b2 = linear(keys[2], keys[3], hidden_size, hidden_size)
    w3, b3 = linear(keys[4], keys[5], hidden_size, hidden_size)
    w4, b4 = linear(keys[6], keys[7], hidden_size, output_size)
    return (w1, b1, w2, b2, w3, b3, w4, b4)


def _reference(params, X):
    w1, b1, w2, b2, w3, b3, w4, b4 = params
    xf = X.reshape(X.shape[0], -1)
    h = jnp.maximum(xf @ w1.T + b1, 0.0)
    h = jnp.maximum(h @ w2.T + b2, 0.0)
    h = jnp.maximum(h @ w3.T + b3, 0.0)
    return h @ w4.T + b4


if __name__ == "__main__":
    # Config-implied small sizes: max_node=8, n_vocab=16 -> input 128.
    batch = 2
    max_node, n_vocab = 8, 16
    input_size = max_node * n_vocab
    hidden_size = 32
    output_size = 8

    key = jax.random.PRNGKey(0)
    k_x, k_t, k_m, k_p, k_r = jax.random.split(key, 5)

    X = jax.random.normal(k_x, (batch, max_node, n_vocab), jnp.float32)
    time_cond = jax.random.normal(k_t, (batch,), jnp.float32)   # unused by forward
    maskX = jnp.ones((batch, max_node), jnp.float32)            # unused by forward

    params = init_params(k_p, input_size, hidden_size, output_size)
    ref = _reference(params, X)

    # f32 matmul operands + f32 output: matches the reference tightly
    # (zero-padding only adds exact zeros to the accumulations).
    prep_f32 = prepare_params(params, compute_dtype=jnp.float32)
    fwd_f32 = jax.jit(lambda a, t, m: mlp_regressor_forward(
        a, t, m, prep_f32, out_dtype=jnp.float32))
    out_f32 = jax.block_until_ready(fwd_f32(X, time_cond, maskX))
    assert out_f32.shape == (batch, output_size)
    assert jnp.allclose(out_f32, ref, atol=1e-5, rtol=1e-5)

    # Default fast path: bf16 matmul operands (all generations), f32 MXU
    # accumulation + f32 epilogue, bf16 output slab, no post-kernel slice.
    prep_bf16 = prepare_params(params)   # compute_dtype=bf16 by default
    fwd_bf16 = jax.jit(lambda a, t, m: mlp_regressor_forward(
        a, t, m, prep_bf16, out_dtype=jnp.bfloat16, return_padded=True))
    out_bf16_padded = jax.block_until_ready(fwd_bf16(X, time_cond, maskX))
    out_bf16 = out_bf16_padded[:, :output_size].astype(jnp.float32)
    assert out_bf16_padded.shape == (batch, 128)
    assert float(jnp.max(jnp.abs(out_bf16 - ref))) < 1e-1

    # Ragged-batch / partial final tile check (grid of 2 with a ragged tail):
    # validates that Pallas' clamped writeback keeps the valid rows correct.
    B_rag = 20
    X_rag = jax.random.normal(k_r, (B_rag, max_node, n_vocab), jnp.float32)
    ref_rag = _reference(params, X_rag)
    fwd_rag = jax.jit(lambda a: mlp_regressor_forward(
        a, None, None, prep_f32, batch_tile=16, out_dtype=jnp.float32))
    out_rag = jax.block_until_ready(fwd_rag(X_rag))
    assert out_rag.shape == (B_rag, output_size)
    assert jnp.allclose(out_rag, ref_rag, atol=1e-5, rtol=1e-5)

    print("KERNEL_OK")
</pallas_src>

<mosaic_0001>
module attributes {stable_mosaic.version = 11 : i64} {
  func.func @_mlp_kernel(%arg0: i32, %arg1: memref<2x128xf32, #tpu.memory_space<vmem>>, %arg2: memref<128x128xf32, #tpu.memory_space<vmem>>, %arg3: memref<128x128xf32, #tpu.memory_space<vmem>>, %arg4: memref<128x128xf32, #tpu.memory_space<vmem>>, %arg5: memref<128x128xf32, #tpu.memory_space<vmem>>, %arg6: memref<1x512xf32, #tpu.memory_space<vmem>>, %arg7: memref<2x128xf32, #tpu.memory_space<vmem>>) attributes {dimension_semantics = [#tpu.dimension_semantics<parallel>], iteration_bounds = array<i64: 1>, scalar_prefetch = 0 : i64, scratch_operands = 0 : i64, tpu.core_type = #tpu.core_type<tc>, window_params = [{transform_indices = @transform_0, window_bounds = array<i64: 2, 128>}, {pipeline_mode = #tpu.pipeline_mode<synchronous>, transform_indices = @transform_1, window_bounds = array<i64: 128, 128>}, {pipeline_mode = #tpu.pipeline_mode<synchronous>, transform_indices = @transform_2, window_bounds = array<i64: 128, 128>}, {pipeline_mode = #tpu.pipeline_mode<synchronous>, transform_indices = @transform_3, window_bounds = array<i64: 128, 128>}, {pipeline_mode = #tpu.pipeline_mode<synchronous>, transform_indices = @transform_4, window_bounds = array<i64: 128, 128>}, {pipeline_mode = #tpu.pipeline_mode<synchronous>, transform_indices = @transform_5, window_bounds = array<i64: 1, 512>}, {transform_indices = @transform_6, window_bounds = array<i64: 2, 128>}]} {
    %c0 = arith.constant 0 : index
    %c0_0 = arith.constant 0 : index
    %0 = vector.load %arg6[%c0, %c0_0] : memref<1x512xf32, #tpu.memory_space<vmem>>, vector<1x128xf32>
    %c0_1 = arith.constant 0 : index
    %c128 = arith.constant 128 : index
    %1 = vector.load %arg6[%c0_1, %c128] : memref<1x512xf32, #tpu.memory_space<vmem>>, vector<1x128xf32>
    %c0_2 = arith.constant 0 : index
    %c256 = arith.constant 256 : index
    %2 = vector.load %arg6[%c0_2, %c256] : memref<1x512xf32, #tpu.memory_space<vmem>>, vector<1x128xf32>
    %c0_3 = arith.constant 0 : index
    %c384 = arith.constant 384 : index
    %3 = vector.load %arg6[%c0_3, %c384] : memref<1x512xf32, #tpu.memory_space<vmem>>, vector<1x128xf32>
    %c0_4 = arith.constant 0 : index
    %c0_5 = arith.constant 0 : index
    %4 = vector.load %arg1[%c0_4, %c0_5] : memref<2x128xf32, #tpu.memory_space<vmem>>, vector<2x128xf32>
    %c0_6 = arith.constant 0 : index
    %c0_7 = arith.constant 0 : index
    %5 = vector.load %arg2[%c0_6, %c0_7] : memref<128x128xf32, #tpu.memory_space<vmem>>, vector<128x128xf32>
    %cst = arith.constant dense<0.000000e+00> : vector<2x128xf32>
    %6 = tpu.matmul %4, %5, %cst {dimension_numbers = #tpu.dot_dimension_numbers<[1], [0], [0], [1], [0, 0, 1, 1], [], []>} : vector<2x128xf32>, vector<128x128xf32>, vector<2x128xf32> -> vector<2x128xf32>
    %7 = vector.broadcast %0 : vector<1x128xf32> to vector<2x128xf32>
    %8 = arith.addf %6, %7 : vector<2x128xf32>
    %cst_8 = arith.constant 0.000000e+00 : f32
    %9 = vector.broadcast %cst_8 : f32 to vector<2x128xf32>
    %10 = arith.maximumf %8, %9 : vector<2x128xf32>
    %c0_9 = arith.constant 0 : index
    %c0_10 = arith.constant 0 : index
    %11 = vector.load %arg3[%c0_9, %c0_10] : memref<128x128xf32, #tpu.memory_space<vmem>>, vector<128x128xf32>
    %cst_11 = arith.constant dense<0.000000e+00> : vector<2x128xf32>
    %12 = tpu.matmul %10, %11, %cst_11 {dimension_numbers = #tpu.dot_dimension_numbers<[1], [0], [0], [1], [0, 0, 1, 1], [], []>} : vector<2x128xf32>, vector<128x128xf32>, vector<2x128xf32> -> vector<2x128xf32>
    %13 = vector.broadcast %1 : vector<1x128xf32> to vector<2x128xf32>
    %14 = arith.addf %12, %13 : vector<2x128xf32>
    %cst_12 = arith.constant 0.000000e+00 : f32
    %15 = vector.broadcast %cst_12 : f32 to vector<2x128xf32>
    %16 = arith.maximumf %14, %15 : vector<2x128xf32>
    %c0_13 = arith.constant 0 : index
    %c0_14 = arith.constant 0 : index
    %17 = vector.load %arg4[%c0_13, %c0_14] : memref<128x128xf32, #tpu.memory_space<vmem>>, vector<128x128xf32>
    %cst_15 = arith.constant dense<0.000000e+00> : vector<2x128xf32>
    %18 = tpu.matmul %16, %17, %cst_15 {dimension_numbers = #tpu.dot_dimension_numbers<[1], [0], [0], [1], [0, 0, 1, 1], [], []>} : vector<2x128xf32>, vector<128x128xf32>, vector<2x128xf32> -> vector<2x128xf32>
    %19 = vector.broadcast %2 : vector<1x128xf32> to vector<2x128xf32>
    %20 = arith.addf %18, %19 : vector<2x128xf32>
    %cst_16 = arith.constant 0.000000e+00 : f32
    %21 = vector.broadcast %cst_16 : f32 to vector<2x128xf32>
    %22 = arith.maximumf %20, %21 : vector<2x128xf32>
    %c0_17 = arith.constant 0 : index
    %c0_18 = arith.constant 0 : index
    %23 = vector.load %arg5[%c0_17, %c0_18] : memref<128x128xf32, #tpu.memory_space<vmem>>, vector<128x128xf32>
    %cst_19 = arith.constant dense<0.000000e+00> : vector<2x128xf32>
    %24 = tpu.matmul %22, %23, %cst_19 {dimension_numbers = #tpu.dot_dimension_numbers<[1], [0], [0], [1], [0, 0, 1, 1], [], []>} : vector<2x128xf32>, vector<128x128xf32>, vector<2x128xf32> -> vector<2x128xf32>
    %25 = vector.broadcast %3 : vector<1x128xf32> to vector<2x128xf32>
    %26 = arith.addf %24, %25 : vector<2x128xf32>
    %c0_20 = arith.constant 0 : index
    %c0_21 = arith.constant 0 : index
    %27 = vector.load %arg7[%c0_20, %c0_21] : memref<2x128xf32, #tpu.memory_space<vmem>>, vector<2x128xf32>
    tpu.vector_store %arg7[%c0_20, %c0_21], %26 {strides = array<i32>} : memref<2x128xf32, #tpu.memory_space<vmem>>, vector<2x128xf32>,
    return
  }
  func.func @transform_0(%arg0: i32) -> (i32, i32) {
    %c0_i32 = arith.constant 0 : i32
    %c0_i32_0 = arith.constant 0 : i32
    return %arg0, %c0_i32 : i32, i32
  }
  func.func @transform_1(%arg0: i32) -> (i32, i32) {
    %c0_i32 = arith.constant 0 : i32
    %c0_i32_0 = arith.constant 0 : i32
    %c0_i32_1 = arith.constant 0 : i32
    return %c0_i32, %c0_i32_0 : i32, i32
  }
  func.func @transform_2(%arg0: i32) -> (i32, i32) {
    %c0_i32 = arith.constant 0 : i32
    %c0_i32_0 = arith.constant 0 : i32
    %c0_i32_1 = arith.constant 0 : i32
    return %c0_i32, %c0_i32_0 : i32, i32
  }
  func.func @transform_3(%arg0: i32) -> (i32, i32) {
    %c0_i32 = arith.constant 0 : i32
    %c0_i32_0 = arith.constant 0 : i32
    %c0_i32_1 = arith.constant 0 : i32
    return %c0_i32, %c0_i32_0 : i32, i32
  }
  func.func @transform_4(%arg0: i32) -> (i32, i32) {
    %c0_i32 = arith.constant 0 : i32
    %c0_i32_0 = arith.constant 0 : i32
    %c0_i32_1 = arith.constant 0 : i32
    return %c0_i32, %c0_i32_0 : i32, i32
  }
  func.func @transform_5(%arg0: i32) -> (i32, i32) {
    %c0_i32 = arith.constant 0 : i32
    %c0_i32_0 = arith.constant 0 : i32
    %c0_i32_1 = arith.constant 0 : i32
    return %c0_i32, %c0_i32_0 : i32, i32
  }
  func.func @transform_6(%arg0: i32) -> (i32, i32) {
    %c0_i32 = arith.constant 0 : i32
    %c0_i32_0 = arith.constant 0 : i32
    return %arg0, %c0_i32 : i32, i32
  }
}

</mosaic_0001>

<bundles_post_ra>
// kernel: _lambda_.1
= control target key start
LH: loop header
LB: loop body
LE: loop exit
PB: predicated region body
PF: predicated region fallthrough
CT: control target
= control target key end

     0   :  { %11 = vsyncpa [#allocation3], 0  ;;  %s960_s0 = inlined_call_operand.vmem [shape: f32[2,128], index: 0, kind: input, shape index: {}]   ;;  %s961_s1 = inlined_call_operand.hbm [shape: f32[128,128], index: 1, kind: input, shape index: {}]   ;;  %s962_s2 = inlined_call_operand.hbm [shape: f32[128,128], index: 2, kind: input, shape index: {}]   ;;  %s963_s3 = inlined_call_operand.hbm [shape: f32[128,128], index: 3, kind: input, shape index: {}]   ;;  %s964_s4 = inlined_call_operand.hbm [shape: f32[128,128], index: 4, kind: input, shape index: {}]   ;;  %s965_s5 = inlined_call_operand.vmem [shape: f32[1,512], index: 5, kind: input, shape index: {}]   ;;  %s966_s6 = inlined_call_operand.hbm [shape: f32[2,128], index: 6, kind: output, shape index: {}]  }
   0x1   :  { %12 = vsyncpa [#allocation6], 0 }
   0x2   :  { %13 = vsyncpa [#allocation9], 0 }
   0x3   :  { %14 = vsyncpa [#allocation4], 0  ;;  %s802_s21 = smov [#allocation5]   ;;  %s803_s23 = smov [#allocation2]  }
   0x4   :  { %s34_s22 = sshll.u32 %s802_s21, 4  ;;  %s22_s24 = sshll.u32 %s803_s23, 4  ;;  %s35_s22 = int_to_ptr.vmem [resolvable:$true] %s34_s22  ;;  %s23_s24 = int_to_ptr.vmem [resolvable:$true] %s22_s24 }
   0x5   :  { %s702_s25 = scalar_lea.vmem %s35_s22, 2048  ;;  %p707_p1 = scmp.lt.s32.totalorder %s35_s22, %s35_s22 }
   0x6   :  { %p703_p0 = scmp.ne.s32.totalorder %s35_s22, %s702_s25  ;;  %p708_p2 = scmp.lt.s32.totalorder %s702_s25, %s702_s25 }
   0x8   :  { %p709_p3 = por %p708_p2, %p707_p1 }
   0xa   :  { %p710_p4 = pnand %p709_p3, %p703_p0 }
   0xc   :  { %713 = shalt.err (!%p710_p4)
}
   0xd   :  { %s804_s26 = smov 128   ;;  %s805_s27 = smov 8  }
   0xe   :  { %40 = dma.hbm_to_vmem [thread:$0]  %s962_s2, 2048, %s35_s22, [#allocation6], %s804_s26, %s804_s26, %s805_s27  }
   0xf   :  { %s722_s30 = scalar_lea.vmem %s23_s24, 2048  ;;  %p727_p6 = scmp.lt.s32.totalorder %s23_s24, %s23_s24 }
  0x10   :  { %p723_p5 = scmp.ne.s32.totalorder %s23_s24, %s722_s30  ;;  %p728_p7 = scmp.lt.s32.totalorder %s722_s30, %s722_s30 }
  0x12   :  { %p729_p8 = por %p728_p7, %p727_p6 }
  0x14   :  { %p730_p9 = pnand %p729_p8, %p723_p5 }
  0x16   :  { %733 = shalt.err (!%p730_p9)
}
  0x17   :  { %28 = dma.hbm_to_vmem [thread:$0]  %s961_s1, 2048, %s23_s24, [#allocation3], %s804_s26, %s804_s26, %s805_s27  }
  0x18   :  { %s806_s9 = smov [#allocation7]   ;;  %s807_s11 = smov [#allocation8]  }
  0x19   :  { %s46_s10 = sshll.u32 %s806_s9, 4  ;;  %s58_s12 = sshll.u32 %s807_s11, 4  ;;  %s47_s10 = int_to_ptr.vmem [resolvable:$true] %s46_s10  ;;  %s59_s12 = int_to_ptr.vmem [resolvable:$true] %s58_s12 }
  0x1a   :  { %s742_s2 = scalar_lea.vmem %s47_s10, 2048  ;;  %p747_p11 = scmp.lt.s32.totalorder %s47_s10, %s47_s10 }
  0x1b   :  { %p743_p10 = scmp.ne.s32.totalorder %s47_s10, %s742_s2  ;;  %p748_p12 = scmp.lt.s32.totalorder %s742_s2, %s742_s2 }
  0x1d   :  { %p749_p13 = por %p748_p12, %p747_p11 }
  0x1f   :  { %p750_p0 = pnand %p749_p13, %p743_p10 }
  0x21   :  { %753 = shalt.err (!%p750_p0)
}
  0x22   :  { %52 = dma.hbm_to_vmem [thread:$0]  %s963_s3, 2048, %s47_s10, [#allocation6], %s804_s26, %s804_s26, %s805_s27  }
  0x23   :  { %s762_s1 = scalar_lea.vmem %s59_s12, 2048  ;;  %p767_p2 = scmp.lt.s32.totalorder %s59_s12, %s59_s12 }
  0x24   :  { %p763_p1 = scmp.ne.s32.totalorder %s59_s12, %s762_s1  ;;  %p768_p3 = scmp.lt.s32.totalorder %s762_s1, %s762_s1 }
  0x26   :  { %p769_p4 = por %p768_p3, %p767_p2 }
  0x28   :  { %p770_p5 = pnand %p769_p4, %p763_p1 }
  0x2a   :  { %773 = shalt.err (!%p770_p5)
}
  0x2b   :  { %64 = dma.hbm_to_vmem [thread:$0]  %s964_s4, 2048, %s59_s12, [#allocation9], %s804_s26, %s804_s26, %s805_s27  }
  0x2c   :  { %794 = dma.done.wait [#allocation3], 2048  }
  0x2d   :  { %795 = vsyncadd [#allocation3], 4294965248 }
  0x2e   :  { %796 = dma.done.wait [#allocation6], 4096  }
  0x2f   :  { %797 = vsyncadd [#allocation6], 4294963200 }
  0x30   :  { %798 = dma.done.wait [#allocation9], 2048  }
  0x31   :  { %799 = vsyncadd [#allocation9], 4294965248  ;;  %v808_v0 = vmov 0.0   ;;  %vm809_vm0 = vmmov 0   ;;  %v99_v1 = vld [vmem:[#allocation2 + $0x78] sm:$0xff]  ;;  %v98_v2 = vld [vmem:[#allocation2 + $0x70] sm:$0xff] }
  0x32   :  { %545 = vmatprep.subr.mxu0 %v808_v0  ;;  %577 = vmatprep.mubr.msk.f32.mxu0 %vm809_vm0, %v808_v0  ;;  %v97_v3 = vld [vmem:[#allocation2 + $0x68] sm:$0xff]  ;;  %v96_v4 = vld [vmem:[#allocation2 + $0x60] sm:$0xff]  ;;  %v192_v5 = vld [vmem:[#allocation5 + $0x78] sm:$0xff]  ;;  %s810_s24 = smov [#allocation10]  }
  0x33   :  { %580 = vmatprep.subr.mxu1 %v808_v0  ;;  %612 = vmatprep.mubr.msk.f32.mxu1 %vm809_vm0, %v808_v0  ;;  %v95_v6 = vld [vmem:[#allocation2 + $0x58] sm:$0xff]  ;;  %v191_v7 = vld [vmem:[#allocation5 + $0x70] sm:$0xff]  ;;  %v190_v8 = vld [vmem:[#allocation5 + $0x68] sm:$0xff]  ;;  %s462_s25 = sshll.u32 %s810_s24, 4  ;;  %s463_s25 = int_to_ptr.vmem [resolvable:$true] %s462_s25 }
  0x34   :  { %546 = vmatpush3.msra.mxu0 %v99_v1  ;;  %581 = vmatpush3.msra.mxu1 %v192_v5  ;;  %v94_v9 = vld [vmem:[#allocation2 + $0x50] sm:$0xff]  ;;  %v189_v10 = vld [vmem:[#allocation5 + $0x60] sm:$0xff]  ;;  %v93_v11 = vld [vmem:[#allocation2 + $0x48] sm:$0xff]  ;;  %s774_s26 = scalar_lea.vmem %s463_s25, 32  ;;  %p779_p7 = scmp.lt.s32.totalorder %s463_s25, %s463_s25 }
  0x35   :  { %547 = vmatprep.subr.mxu0 %v808_v0  ;;  %582 = vmatprep.subr.mxu1 %v808_v0  ;;  %v188_v12 = vld [vmem:[#allocation5 + $0x58] sm:$0xff]  ;;  %v92_v13 = vld [vmem:[#allocation2 + $0x40] sm:$0xff]  ;;  %v187_v14 = vld [vmem:[#allocation5 + $0x50] sm:$0xff]  ;;  %p775_p6 = scmp.ne.s32.totalorder %s463_s25, %s774_s26  ;;  %p780_p8 = scmp.lt.s32.totalorder %s774_s26, %s774_s26 }
  0x36   :  { %548 = vmatpush3.msra.mxu0 %v98_v2  ;;  %583 = vmatpush3.msra.mxu1 %v191_v7  ;;  %v91_v15 = vld [vmem:[#allocation2 + $0x38] sm:$0xff]  ;;  %v186_v16 = vld [vmem:[#allocation5 + $0x48] sm:$0xff]  ;;  %v90_v17 = vld [vmem:[#allocation2 + $0x30] sm:$0xff] }
  0x37   :  { %549 = vmatprep.subr.mxu0 %v808_v0  ;;  %584 = vmatprep.subr.mxu1 %v808_v0  ;;  %v185_v18 = vld [vmem:[#allocation5 + $0x40] sm:$0xff]  ;;  %v89_v19 = vld [vmem:[#allocation2 + $0x28] sm:$0xff]  ;;  %v184_v20 = vld [vmem:[#allocation5 + $0x38] sm:$0xff]  ;;  %p781_p9 = por %p780_p8, %p779_p7 }
  0x38   :  { %550 = vmatpush3.msra.mxu0 %v97_v3  ;;  %585 = vmatpush3.msra.mxu1 %v190_v8  ;;  %v88_v21 = vld [vmem:[#allocation2 + $0x20] sm:$0xff]  ;;  %v183_v22 = vld [vmem:[#allocation5 + $0x30] sm:$0xff]  ;;  %v87_v23 = vld [vmem:[#allocation2 + $0x18] sm:$0xff] }
  0x39   :  { %551 = vmatprep.subr.mxu0 %v808_v0  ;;  %586 = vmatprep.subr.mxu1 %v808_v0  ;;  %v182_v24 = vld [vmem:[#allocation5 + $0x28] sm:$0xff]  ;;  %v86_v25 = vld [vmem:[#allocation2 + $0x10] sm:$0xff]  ;;  %v181_v26 = vld [vmem:[#allocation5 + $0x20] sm:$0xff]  ;;  %p782_p10 = pnand %p781_p9, %p775_p6 }
  0x3a   :  { %552 = vmatpush3.msra.mxu0 %v96_v4  ;;  %587 = vmatpush3.msra.mxu1 %v189_v10  ;;  %v85_v27 = vld [vmem:[#allocation2 + $0x8] sm:$0xff]  ;;  %v180_v28 = vld [vmem:[#allocation5 + $0x18] sm:$0xff]  ;;  %v84_v29 = vld [vmem:[#allocation2] sm:$0xff] }
  0x3b   :  { %553 = vmatprep.subr.mxu0 %v808_v0  ;;  %588 = vmatprep.subr.mxu1 %v808_v0  ;;  %v83_v30 = vld [vmem:[%s960_s0] sm:$0x3]  ;;  %v179_v31 = vld [vmem:[#allocation5 + $0x10] sm:$0xff]  ;;  %v178_v32 = vld [vmem:[#allocation5 + $0x8] sm:$0xff] }
  0x3c   :  { %554 = vmatpush3.msra.mxu0 %v95_v6  ;;  %589 = vmatpush3.msra.mxu1 %v188_v12  ;;  %v177_v33 = vld [vmem:[#allocation5] sm:$0xff]  ;;  %v285_v34 = vld [vmem:[#allocation7 + $0x78] sm:$0xff]  ;;  %v284_v35 = vld [vmem:[#allocation7 + $0x70] sm:$0xff] }
  0x3d   :  { %555 = vmatprep.subr.mxu0 %v808_v0  ;;  %590 = vmatprep.subr.mxu1 %v808_v0  ;;  %v283_v36 = vld [vmem:[#allocation7 + $0x68] sm:$0xff]  ;;  %v282_v37 = vld [vmem:[#allocation7 + $0x60] sm:$0xff]  ;;  %v281_v38 = vld [vmem:[#allocation7 + $0x58] sm:$0xff] }
  0x3e   :  { %556 = vmatpush3.msra.mxu0 %v94_v9  ;;  %591 = vmatpush3.msra.mxu1 %v187_v14  ;;  %v280_v39 = vld [vmem:[#allocation7 + $0x50] sm:$0xff]  ;;  %v279_v40 = vld [vmem:[#allocation7 + $0x48] sm:$0xff]  ;;  %v278_v41 = vld [vmem:[#allocation7 + $0x40] sm:$0xff] }
  0x3f   :  { %557 = vmatprep.subr.mxu0 %v808_v0  ;;  %592 = vmatprep.subr.mxu1 %v808_v0  ;;  %v277_v42 = vld [vmem:[#allocation7 + $0x38] sm:$0xff]  ;;  %v276_v43 = vld [vmem:[#allocation7 + $0x30] sm:$0xff]  ;;  %v275_v44 = vld [vmem:[#allocation7 + $0x28] sm:$0xff] }
  0x40   :  { %558 = vmatpush3.msra.mxu0 %v93_v11  ;;  %593 = vmatpush3.msra.mxu1 %v186_v16  ;;  %v274_v45 = vld [vmem:[#allocation7 + $0x20] sm:$0xff]  ;;  %v273_v46 = vld [vmem:[#allocation7 + $0x18] sm:$0xff]  ;;  %v272_v52 = vld [vmem:[#allocation7 + $0x10] sm:$0xff] }
  0x41   :  { %559 = vmatprep.subr.mxu0 %v808_v0  ;;  %594 = vmatprep.subr.mxu1 %v808_v0  ;;  %v473_v47 = vld [vmem:[%s965_s5] ss:$0 sm:$0xff]  ;;  %v271_v53 = vld [vmem:[#allocation7 + $0x8] sm:$0xff]  ;;  %v378_v55 = vld [vmem:[#allocation8 + $0x78] sm:$0xff] }
  0x42   :  { %560 = vmatpush3.msra.mxu0 %v92_v13  ;;  %595 = vmatpush3.msra.mxu1 %v185_v18  ;;  %v270_v54 = vld [vmem:[#allocation7] sm:$0xff]  ;;  %v377_v56 = vld [vmem:[#allocation8 + $0x70] sm:$0xff]  ;;  %v376_v57 = vld [vmem:[#allocation8 + $0x68] sm:$0xff] }
  0x43   :  { %561 = vmatprep.subr.mxu0 %v808_v0  ;;  %596 = vmatprep.subr.mxu1 %v808_v0  ;;  %v375_v58 = vld [vmem:[#allocation8 + $0x60] sm:$0xff]  ;;  %v374_v59 = vld [vmem:[#allocation8 + $0x58] sm:$0xff]  ;;  %v373_v60 = vld [vmem:[#allocation8 + $0x50] sm:$0xff] }
  0x44   :  { %562 = vmatpush3.msra.mxu0 %v91_v15  ;;  %597 = vmatpush3.msra.mxu1 %v184_v20  ;;  %v372_v61 = vld [vmem:[#allocation8 + $0x48] sm:$0xff]  ;;  %v371_v62 = vld [vmem:[#allocation8 + $0x40] sm:$0xff]  ;;  %v370_v63 = vld [vmem:[#allocation8 + $0x38] sm:$0xff] }
  0x45   :  { %563 = vmatprep.subr.mxu0 %v808_v0  ;;  %598 = vmatprep.subr.mxu1 %v808_v0  ;;  %v369_v1 = vld [vmem:[#allocation8 + $0x30] sm:$0xff]  ;;  %v368_v2 = vld [vmem:[#allocation8 + $0x28] sm:$0xff]  ;;  %v367_v3 = vld [vmem:[#allocation8 + $0x20] sm:$0xff] }
  0x46   :  { %564 = vmatpush3.msra.mxu0 %v90_v17  ;;  %599 = vmatpush3.msra.mxu1 %v183_v22  ;;  %v366_v4 = vld [vmem:[#allocation8 + $0x18] sm:$0xff]  ;;  %v474_v5 = vld [vmem:[%s965_s5 + $0x1] ss:$0 sm:$0xff]  ;;  %v365_v10 = vld [vmem:[#allocation8 + $0x10] sm:$0xff] }
  0x47   :  { %565 = vmatprep.subr.mxu0 %v808_v0  ;;  %600 = vmatprep.subr.mxu1 %v808_v0  ;;  %v364_v11 = vld [vmem:[#allocation8 + $0x8] sm:$0xff]  ;;  %v363_v12 = vld [vmem:[#allocation8] sm:$0xff] }
  0x48   :  { %566 = vmatpush3.msra.mxu0 %v89_v19  ;;  %601 = vmatpush3.msra.mxu1 %v182_v24  ;;  %v475_v13 = vld [vmem:[%s965_s5 + $0x2] ss:$0 sm:$0xff]  ;;  %v476_v18 = vld [vmem:[%s965_s5 + $0x3] ss:$0 sm:$0xff] }
  0x49   :  { %567 = vmatprep.subr.mxu0 %v808_v0  ;;  %602 = vmatprep.subr.mxu1 %v808_v0 }
  0x4a   :  { %568 = vmatpush3.msra.mxu0 %v88_v21  ;;  %603 = vmatpush3.msra.mxu1 %v181_v26 }
  0x4b   :  { %569 = vmatprep.subr.mxu0 %v808_v0  ;;  %604 = vmatprep.subr.mxu1 %v808_v0 }
  0x4c   :  { %570 = vmatpush3.msra.mxu0 %v87_v23  ;;  %605 = vmatpush3.msra.mxu1 %v180_v28 }
  0x4d   :  { %571 = vmatprep.subr.mxu0 %v808_v0  ;;  %606 = vmatprep.subr.mxu1 %v808_v0 }
  0x4e   :  { %572 = vmatpush3.msra.mxu0 %v86_v25  ;;  %607 = vmatpush3.msra.mxu1 %v179_v31 }
  0x4f   :  { %573 = vmatprep.subr.mxu0 %v808_v0  ;;  %608 = vmatprep.subr.mxu1 %v808_v0 }
  0x50   :  { %574 = vmatpush3.msra.mxu0 %v85_v27  ;;  %609 = vmatpush3.msra.mxu1 %v178_v32 }
  0x51   :  { %575 = vmatprep.subr.mxu0 %v808_v0  ;;  %610 = vmatprep.subr.mxu1 %v808_v0 }
  0x52   :  { %576 = vmatpush3.msra.mxu0 %v84_v29  ;;  %611 = vmatpush3.msra.mxu1 %v177_v33 }
  0x53   :  { %578 = vmatmul.mubr.f32.vlgmr.msra.gmra.mxu0 %v83_v30  ;;  %615 = vmatprep.subr.mxu0 %v808_v0 }
  0x54   :  { %647 = vmatprep.mubr.msk.f32.mxu0 %vm809_vm0, %v808_v0  ;;  %650 = vmatprep.subr.mxu1 %v808_v0 }
  0x55   :  { %616 = vmatpush3.msra.mxu0 %v285_v34 }
  0x56   :  { %617 = vmatprep.subr.mxu0 %v808_v0 }
  0x57   :  { %618 = vmatpush3.msra.mxu0 %v284_v35 }
  0x58   :  { %619 = vmatprep.subr.mxu0 %v808_v0 }
  0x59   :  { %620 = vmatpush3.msra.mxu0 %v283_v36 }
  0x5a   :  { %621 = vmatprep.subr.mxu0 %v808_v0 }
  0x5b   :  { %622 = vmatpush3.msra.mxu0 %v282_v37 }
  0x5c   :  { %623 = vmatprep.subr.mxu0 %v808_v0 }
  0x5d   :  { %624 = vmatpush3.msra.mxu0 %v281_v38 }
  0x5e   :  { %625 = vmatprep.subr.mxu0 %v808_v0 }
  0x5f   :  { %626 = vmatpush3.msra.mxu0 %v280_v39 }
  0x60   :  { %627 = vmatprep.subr.mxu0 %v808_v0 }
  0x61   :  { %628 = vmatpush3.msra.mxu0 %v279_v40 }
  0x62   :  { %629 = vmatprep.subr.mxu0 %v808_v0 }
  0x63   :  { %630 = vmatpush3.msra.mxu0 %v278_v41 }
  0x64   :  { %631 = vmatprep.subr.mxu0 %v808_v0 }
  0x65   :  { %632 = vmatpush3.msra.mxu0 %v277_v42 }
  0x66   :  { %633 = vmatprep.subr.mxu0 %v808_v0 }
  0x67   :  { %634 = vmatpush3.msra.mxu0 %v276_v43 }
  0x68   :  { %635 = vmatprep.subr.mxu0 %v808_v0 }
  0x69   :  { %636 = vmatpush3.msra.mxu0 %v275_v44 }
  0x6a   :  { %637 = vmatprep.subr.mxu0 %v808_v0 }
  0x6b   :  { %638 = vmatpush3.msra.mxu0 %v274_v45 }
  0x6c   :  { %639 = vmatprep.subr.mxu0 %v808_v0 }
  0x6d   :  { %640 = vmatpush3.msra.mxu0 %v273_v46 }
  0x6e   :  { %641 = vmatprep.subr.mxu0 %v808_v0 }
  0x6f   :  { %642 = vmatpush3.msra.mxu0 %v272_v52 }
  0x70   :  { %643 = vmatprep.subr.mxu0 %v808_v0 }
  0x71   :  { %644 = vmatpush3.msra.mxu0 %v271_v53 }
  0x72   :  { %645 = vmatprep.subr.mxu0 %v808_v0 }
  0x73   :  { %646 = vmatpush3.msra.mxu0 %v270_v54 }
 0x113   :  { %v172_v48 = vpop.f32.mrf.mxu0 }
 0x114   :  { %v173_v49 = vadd.f32 %v473_v47, %v172_v48 }
 0x115   :  { %v579_v50 = vpop.f32.mrf.mxu0 }
 0x116   :  { %v176_v51 = vmax.f32 %v173_v49, 0.0 }
 0x118   :  { %613 = vmatmul.mubr.f32.vlgmr.msra.gmra.mxu1 %v176_v51 }
 0x119   :  { %682 = vmatprep.mubr.msk.f32.mxu1 %vm809_vm0, %v808_v0  ;;  %651 = vmatpush3.msra.mxu1 %v378_v55 }
 0x11a   :  { %652 = vmatprep.subr.mxu1 %v808_v0 }
 0x11b   :  { %653 = vmatpush3.msra.mxu1 %v377_v56 }
 0x11c   :  { %654 = vmatprep.subr.mxu1 %v808_v0 }
 0x11d   :  { %655 = vmatpush3.msra.mxu1 %v376_v57 }
 0x11e   :  { %656 = vmatprep.subr.mxu1 %v808_v0 }
 0x11f   :  { %657 = vmatpush3.msra.mxu1 %v375_v58 }
 0x120   :  { %658 = vmatprep.subr.mxu1 %v808_v0 }
 0x121   :  { %659 = vmatpush3.msra.mxu1 %v374_v59 }
 0x122   :  { %660 = vmatprep.subr.mxu1 %v808_v0 }
 0x123   :  { %661 = vmatpush3.msra.mxu1 %v373_v60 }
 0x124   :  { %662 = vmatprep.subr.mxu1 %v808_v0 }
 0x125   :  { %663 = vmatpush3.msra.mxu1 %v372_v61 }
 0x126   :  { %664 = vmatprep.subr.mxu1 %v808_v0 }
 0x127   :  { %665 = vmatpush3.msra.mxu1 %v371_v62 }
 0x128   :  { %666 = vmatprep.subr.mxu1 %v808_v0 }
 0x129   :  { %667 = vmatpush3.msra.mxu1 %v370_v63 }
 0x12a   :  { %668 = vmatprep.subr.mxu1 %v808_v0 }
 0x12b   :  { %669 = vmatpush3.msra.mxu1 %v369_v1 }
 0x12c   :  { %670 = vmatprep.subr.mxu1 %v808_v0 }
 0x12d   :  { %671 = vmatpush3.msra.mxu1 %v368_v2 }
 0x12e   :  { %672 = vmatprep.subr.mxu1 %v808_v0 }
 0x12f   :  { %673 = vmatpush3.msra.mxu1 %v367_v3 }
 0x130   :  { %674 = vmatprep.subr.mxu1 %v808_v0 }
 0x131   :  { %675 = vmatpush3.msra.mxu1 %v366_v4 }
 0x132   :  { %676 = vmatprep.subr.mxu1 %v808_v0 }
 0x133   :  { %677 = vmatpush3.msra.mxu1 %v365_v10 }
 0x134   :  { %678 = vmatprep.subr.mxu1 %v808_v0 }
 0x135   :  { %679 = vmatpush3.msra.mxu1 %v364_v11 }
 0x136   :  { %680 = vmatprep.subr.mxu1 %v808_v0 }
 0x137   :  { %681 = vmatpush3.msra.mxu1 %v363_v12 }
 0x1d8   :  { %v265_v6 = vpop.f32.mrf.mxu1 }
 0x1d9   :  { %v266_v7 = vadd.f32 %v474_v5, %v265_v6 }
 0x1da   :  { %v614_v8 = vpop.f32.mrf.mxu1 }
 0x1db   :  { %v269_v9 = vmax.f32 %v266_v7, 0.0 }
 0x1dd   :  { %648 = vmatmul.mubr.f32.vlgmr.msra.gmra.mxu0 %v269_v9 }
 0x29d   :  { %v358_v14 = vpop.f32.mrf.mxu0 }
 0x29e   :  { %v359_v15 = vadd.f32 %v475_v13, %v358_v14 }
 0x29f   :  { %v649_v16 = vpop.f32.mrf.mxu0 }
 0x2a0   :  { %v362_v17 = vmax.f32 %v359_v15, 0.0 }
 0x2a2   :  { %683 = vmatmul.mubr.f32.vlgmr.msra.gmra.mxu1 %v362_v17 }
 0x362   :  { %v451_v19 = vpop.f32.mrf.mxu1 }
 0x363   :  { %v452_v20 = vadd.f32 %v476_v18, %v451_v19 }
 0x364   :  { %v684_v0 = vpop.f32.mrf.mxu1 }
 0x365   :  { %455 = vst [vmem:[#allocation10] sm:$0x3] %v452_v20 }
 0x366   :  { %785 = shalt.err (!%p782_p10)
}
 0x367   :  { %465 = dma.vmem_to_hbm [thread:$0]  %s463_s25, 32, %s966_s6, [#allocation4]  }
 0x368   :  { %800 = dma.done.wait [#allocation4], 32  }
 0x369   :  { %801 = vsyncadd [#allocation4], 4294967264 }
 0x36a   :  { %469 = vsyncpa [#allocation3], 1 }
 0x36b   :  { %470 = vsyncpa [#allocation6], 1 }
 0x36c   :  { %471 = vsyncpa [#allocation9], 1 }
 0x36d   :  { %472 = vsyncpa [#allocation4], 1 }

</bundles_post_ra>
